<compile_context>
chip_gen: v7x
topology: tpu7x:2x2x1
jax: 0.10.0
libtpu: 0.0.40
codegen_flags: <defaults>
</compile_context>

<pallas_src>
import functools

import jax
import jax.numpy as jnp
from jax.experimental import pallas as pl
from jax.experimental.pallas import tpu as pltpu


def _ortho_origin_kernel(a_ref, orig_ref, *, render_size, m_tile):
    """One grid step == (batch-tile, M-tile).

    a_ref:    (B_TILE, 3, 3) VMEM  - folded per-batch coefficients
              a[:, :, 0] =  cam2world[:, :3, 0] * ortho_scale
              a[:, :, 1] = -cam2world[:, :3, 1] * ortho_scale
              a[:, :, 2] =  cam2world[:, :3, 3]
    orig_ref: (B_TILE, 3, M_TILE) VMEM - channel-major ray origins
    """
    R = render_size

    # Global flattened pixel index for this M-tile; after torch's meshgrid +
    # flip(0) the x pixel coord is m % R and the y pixel coord is m // R.
    m0 = pl.program_id(1) * m_tile
    m = jax.lax.broadcasted_iota(jnp.int32, (1, 1, m_tile), 2) + m0
    if R & (R - 1) == 0:                  # power of two -> cheap bitwise ops
        shift = R.bit_length() - 1
        x_pix = (m & (R - 1)).astype(jnp.float32)
        y_pix = (m >> shift).astype(jnp.float32)
    else:
        x_pix = (m % R).astype(jnp.float32)
        y_pix = (m // R).astype(jnp.float32)

    inv_r = 1.0 / R                       # python scalar: no captured array
    x_base = (x_pix + 0.5) * inv_r - 0.5  # (1, 1, M_TILE)
    y_base = (y_pix + 0.5) * inv_r - 0.5

    a = a_ref[...].astype(jnp.float32)    # (B_TILE, 3, 3)
    orig = (a[:, :, 0:1] * x_base
            + a[:, :, 1:2] * y_base
            + a[:, :, 2:3])               # (B_TILE, 3, M_TILE)
    orig_ref[...] = orig.astype(orig_ref.dtype)


def _pick_m_tile(M, cap=32768):
    """Lane-dense M tile: largest multiple-of-128 divisor of M <= cap."""
    if M <= cap or M % 128 != 0:
        return M
    d = cap - cap % 128
    while d >= 128 and M % d != 0:
        d -= 128
    return d if d >= 128 else M


def _pick_b_tile(N, m_tile, itemsize, n_m_tiles, target_bytes=1 << 20):
    """Batch tile so each output block is ~target_bytes; must divide N."""
    per_b = 3 * m_tile * itemsize
    b = int(max(1, min(N, target_bytes // max(per_b, 1))))
    while N % b != 0:
        b -= 1
    # Keep >= 2 total grid steps when possible so megacore chips' TensorCores
    # both get work (near-zero impact on single-TC v5e/v6e).
    if n_m_tiles * (N // b) < 2 and N > 1:
        b = max(1, N // 2)
        while N % b != 0:
            b -= 1
    return b


def ortho_ray_sampler_channel_major(cam2world_matrix, ortho_scale, render_size):
    """Channel-major variant (no transpose, no broadcast).

    Returns:
      ray_origins_cm: (N, 3, M)  pixel axis on lanes
      ray_dir_vec:    (N, 3)     per-batch direction (constant over pixels)
    """
    N = cam2world_matrix.shape[0]
    M = render_size ** 2
    dtype = cam2world_matrix.dtype
    c = cam2world_matrix

    scale = jnp.broadcast_to(
        jnp.asarray(ortho_scale, dtype).reshape(-1), (N,)).reshape(N, 1)

    # Fold opencv2blender (negate cols 1, 2 of cam2world) and ortho_scale into
    # a tiny (N, 3, 3) matrix:  origin = a0 * x_base + a1 * y_base + a2.
    a = jnp.stack(
        [c[:, :3, 0] * scale, -c[:, :3, 1] * scale, c[:, :3, 3]], axis=-1)
    # Direction = column 2 of (cam2world @ flip) -> constant per batch element.
    dir_vec = -c[:, :3, 2]

    m_tile = _pick_m_tile(M)
    n_m_tiles = M // m_tile
    b_tile = _pick_b_tile(N, m_tile, jnp.dtype(dtype).itemsize, n_m_tiles)
    n_b_tiles = N // b_tile

    kernel = functools.partial(
        _ortho_origin_kernel, render_size=render_size, m_tile=m_tile)
    orig_cm = pl.pallas_call(
        kernel,
        out_shape=jax.ShapeDtypeStruct((N, 3, M), dtype),
        grid=(n_b_tiles, n_m_tiles),
        in_specs=[pl.BlockSpec((b_tile, 3, 3), lambda b, m: (b, 0, 0))],
        out_specs=pl.BlockSpec((b_tile, 3, m_tile), lambda b, m: (b, 0, m)),
        compiler_params=pltpu.CompilerParams(
            dimension_semantics=("parallel", "parallel")),
    )(a)
    return orig_cm, dir_vec


def ortho_ray_sampler(cam2world_matrix, intrinsics, ortho_scale, render_size):
    """JAX/Pallas equivalent of OrthoRaySampler.forward (PyTorch contract).

    cam2world_matrix: (N, 4, 4)
    intrinsics:       unused (kept for signature parity)
    ortho_scale:      (N,) or scalar
    render_size:      int

    Returns (ray_origins, ray_dirs), each (N, render_size**2, 3).
    """
    del intrinsics  # NOT USED, matching the PyTorch module
    N = cam2world_matrix.shape[0]
    M = render_size ** 2
    orig_cm, dir_vec = ortho_ray_sampler_channel_major(
        cam2world_matrix, ortho_scale, render_size)
    # Glue to PyTorch's (N, M, 3) layout.  Consumers wanting to avoid this
    # extra HBM pass should use ortho_ray_sampler_channel_major directly.
    ray_origins = jnp.transpose(orig_cm, (0, 2, 1))
    ray_dirs = jnp.broadcast_to(dir_vec[:, None, :], (N, M, 3))
    return ray_origins, ray_dirs


def _reference(cam2world_matrix, ortho_scale, render_size):
    """Pure-JAX re-implementation of the PyTorch forward, for validation."""
    N = cam2world_matrix.shape[0]
    R = render_size
    M = R * R
    dtype = cam2world_matrix.dtype
    ii, jj = jnp.meshgrid(jnp.arange(R), jnp.arange(R), indexing="ij")
    uv = jnp.stack([jj, ii], axis=0).reshape(2, -1).T.astype(dtype)  # (M, 2)
    x_cam = (uv[:, 0] + 0.5) / R
    y_cam = (uv[:, 1] + 0.5) / R
    scale = jnp.broadcast_to(
        jnp.asarray(ortho_scale, dtype).reshape(-1), (N,)).reshape(N, 1)
    x_lift = (x_cam[None, :] - 0.5) * scale
    y_lift = (y_cam[None, :] - 0.5) * scale
    z = jnp.zeros((N, M), dtype)
    ones = jnp.ones((N, M), dtype)
    cam_rel = jnp.stack([x_lift, y_lift, z, ones], axis=-1)          # (N, M, 4)
    flip = jnp.diag(jnp.array([1.0, -1.0, -1.0, 1.0], dtype))
    c = cam2world_matrix @ flip
    origins = jnp.einsum("nkc,nmc->nmk", c, cam_rel)[:, :, :3]
    dirs = jnp.broadcast_to(c[:, None, :3, 2], (N, M, 3))
    return origins, dirs


def _check_case(key, N, render_size):
    k1, k2 = jax.random.split(key)
    cam2world = jax.random.normal(k1, (N, 4, 4), dtype=jnp.float32)
    ortho_scale = jax.random.uniform(
        k2, (N,), dtype=jnp.float32, minval=0.5, maxval=2.0)
    intrinsics = jnp.zeros((N, 3, 3), jnp.float32)  # unused by the module

    origins, dirs = ortho_ray_sampler(cam2world, intrinsics, ortho_scale,
                                      render_size)
    jax.block_until_ready((origins, dirs))

    ref_o, ref_d = _reference(cam2world, ortho_scale, render_size)
    M = render_size ** 2
    assert origins.shape == (N, M, 3)
    assert dirs.shape == (N, M, 3)
    assert origins.dtype == cam2world.dtype and dirs.dtype == cam2world.dtype
    assert jnp.allclose(origins, ref_o, atol=1e-5, rtol=1e-5)
    assert jnp.allclose(dirs, ref_d, atol=1e-5, rtol=1e-5)


if __name__ == "__main__":
    key = jax.random.PRNGKey(0)
    ka, kb = jax.random.split(key)

    # Power-of-two render size (bitwise x/y decode path).
    _check_case(ka, N=2, render_size=16)
    # Non-power-of-two render size + odd batch (mod/div path, b_tile=1).
    _check_case(kb, N=3, render_size=12)

    print("KERNEL_OK")
</pallas_src>

<mosaic_0001>
module attributes {stable_mosaic.version = 11 : i64} {
  func.func @_ortho_origin_kernel(%arg0: i32, %arg1: i32, %arg2: memref<1x3x3xf32, #tpu.memory_space<vmem>>, %arg3: memref<1x3x256xf32, #tpu.memory_space<vmem>>) attributes {dimension_semantics = [#tpu.dimension_semantics<parallel>, #tpu.dimension_semantics<parallel>], iteration_bounds = array<i64: 2, 1>, scalar_prefetch = 0 : i64, scratch_operands = 0 : i64, tpu.core_type = #tpu.core_type<tc>, window_params = [{transform_indices = @transform_0, window_bounds = array<i64: 1, 3, 3>}, {transform_indices = @transform_1, window_bounds = array<i64: 1, 3, 256>}]} {
    %c256_i32 = arith.constant 256 : i32
    %0 = arith.muli %arg1, %c256_i32 : i32
    %1 = tpu.iota {dimensions = array<i32: 2>} : vector<1x1x256xi32>
    %2 = vector.broadcast %0 : i32 to vector<1x1x256xi32>
    %3 = arith.addi %1, %2 : vector<1x1x256xi32>
    %c15_i32 = arith.constant 15 : i32
    %4 = vector.broadcast %c15_i32 : i32 to vector<1x1x256xi32>
    %5 = arith.andi %3, %4 : vector<1x1x256xi32>
    %6 = arith.sitofp %5 : vector<1x1x256xi32> to vector<1x1x256xf32>
    %c4_i32 = arith.constant 4 : i32
    %7 = vector.broadcast %c4_i32 : i32 to vector<1x1x256xi32>
    %8 = arith.shrsi %3, %7 : vector<1x1x256xi32>
    %9 = arith.sitofp %8 : vector<1x1x256xi32> to vector<1x1x256xf32>
    %cst = arith.constant 5.000000e-01 : f32
    %10 = vector.broadcast %cst : f32 to vector<1x1x256xf32>
    %11 = arith.addf %6, %10 : vector<1x1x256xf32>
    %cst_0 = arith.constant 6.250000e-02 : f32
    %12 = vector.broadcast %cst_0 : f32 to vector<1x1x256xf32>
    %13 = arith.mulf %11, %12 : vector<1x1x256xf32>
    %cst_1 = arith.constant 5.000000e-01 : f32
    %14 = vector.broadcast %cst_1 : f32 to vector<1x1x256xf32>
    %15 = arith.subf %13, %14 : vector<1x1x256xf32>
    %cst_2 = arith.constant 5.000000e-01 : f32
    %16 = vector.broadcast %cst_2 : f32 to vector<1x1x256xf32>
    %17 = arith.addf %9, %16 : vector<1x1x256xf32>
    %cst_3 = arith.constant 6.250000e-02 : f32
    %18 = vector.broadcast %cst_3 : f32 to vector<1x1x256xf32>
    %19 = arith.mulf %17, %18 : vector<1x1x256xf32>
    %cst_4 = arith.constant 5.000000e-01 : f32
    %20 = vector.broadcast %cst_4 : f32 to vector<1x1x256xf32>
    %21 = arith.subf %19, %20 : vector<1x1x256xf32>
    %c0 = arith.constant 0 : index
    %c0_5 = arith.constant 0 : index
    %c0_6 = arith.constant 0 : index
    %22 = vector.load %arg2[%c0, %c0_5, %c0_6] : memref<1x3x3xf32, #tpu.memory_space<vmem>>, vector<1x3x3xf32>
    %23 = vector.extract_strided_slice %22 {offsets = [0, 0, 0], sizes = [1, 3, 1], strides = [1, 1, 1]} : vector<1x3x3xf32> to vector<1x3x1xf32>
    %24 = vector.broadcast %23 : vector<1x3x1xf32> to vector<1x3x256xf32>
    %25 = vector.broadcast %15 : vector<1x1x256xf32> to vector<1x3x256xf32>
    %26 = arith.mulf %24, %25 : vector<1x3x256xf32>
    %27 = vector.extract_strided_slice %22 {offsets = [0, 0, 1], sizes = [1, 3, 1], strides = [1, 1, 1]} : vector<1x3x3xf32> to vector<1x3x1xf32>
    %28 = vector.broadcast %27 : vector<1x3x1xf32> to vector<1x3x256xf32>
    %29 = vector.broadcast %21 : vector<1x1x256xf32> to vector<1x3x256xf32>
    %30 = arith.mulf %28, %29 : vector<1x3x256xf32>
    %31 = arith.addf %26, %30 : vector<1x3x256xf32>
    %32 = vector.extract_strided_slice %22 {offsets = [0, 0, 2], sizes = [1, 3, 1], strides = [1, 1, 1]} : vector<1x3x3xf32> to vector<1x3x1xf32>
    %33 = vector.broadcast %32 : vector<1x3x1xf32> to vector<1x3x256xf32>
    %34 = arith.addf %31, %33 : vector<1x3x256xf32>
    %c0_7 = arith.constant 0 : index
    %c0_8 = arith.constant 0 : index
    %c0_9 = arith.constant 0 : index
    %35 = vector.load %arg3[%c0_7, %c0_8, %c0_9] : memref<1x3x256xf32, #tpu.memory_space<vmem>>, vector<1x3x256xf32>
    tpu.vector_store %arg3[%c0_7, %c0_8, %c0_9], %34 {strides = array<i32>} : memref<1x3x256xf32, #tpu.memory_space<vmem>>, vector<1x3x256xf32>,
    return
  }
  func.func @transform_0(%arg0: i32, %arg1: i32) -> (i32, i32, i32) {
    %c0_i32 = arith.constant 0 : i32
    %c0_i32_0 = arith.constant 0 : i32
    %c0_i32_1 = arith.constant 0 : i32
    return %arg0, %c0_i32, %c0_i32_0 : i32, i32, i32
  }
  func.func @transform_1(%arg0: i32, %arg1: i32) -> (i32, i32, i32) {
    %c0_i32 = arith.constant 0 : i32
    %c0_i32_0 = arith.constant 0 : i32
    return %arg0, %c0_i32, %arg1 : i32, i32, i32
  }
}

</mosaic_0001>

<bundles_post_ra>
// kernel: tpu_custom_call.1
= control target key start
LH: loop header
LB: loop body
LE: loop exit
PB: predicated region body
PF: predicated region fallthrough
CT: control target
= control target key end

     0   :  { %s355_s6 = smov 0   ;;  %s357_s7 = smov 0   ;;  %s392_s0 = inlined_call_operand.vmem [shape: f32[2,3,3], index: 0, kind: input, shape index: {}]   ;;  %s393_s1 = inlined_call_operand.vmem [shape: f32[2,3,256], index: 1, kind: output, shape index: {}]  }
   0x1   :  { %s359_s8 = smov 0  }
   0x2 LB: > { %s23_s9 = sadd.s32 1, %s336_s7  ;;  %p276_p0 = scmp.ge.s32.totalorder %s340_s8, 1  ;;  %s340_s8 = sphi %s359_s8, %s11_s8   ;;  %s336_s7 = sphi %s357_s7, %s395_s7   ;;  %s332_s6 = sphi %s355_s6, %s394_s6  }
   0x3   : > { %p25_p1 = scmp.ge.s32.totalorder %s23_s9, 2  ;;  %p100_p2 = scmp.lt.s32.totalorder %s340_s8, 3 }
   0x5   : > { %s397_s9 = smov (%p25_p1, %s23_s9), 0  ;;  %p101_p3 = pnand %p276_p0, %p100_p2 }
   0x6   : > { %p123_p4 = scmp.lt.s32.totalorder (!%p101_p3), %s332_s6, 1  ;;  %v342_v0 = vmov (!%p101_p3), 0   ;;  %v343_v1 = vmov (!%p101_p3), 2   ;;  %v344_v3 = vmov (!%p101_p3), 1   ;;  %v138_v4 = vlaneseq (!%p101_p3) }
   0x7   : > { %104 = sbr.rel (%p101_p3) target bundleno = 160 (0xa0), region = 24  ;;  %314 = vset.pattern.permute.xlu0 (!%p101_p3), %v342_v0  ;;  %316 = vset.pattern.permute.xlu1 (!%p101_p3), %v343_v1 }
   0x8   : > { %v139_v5 = vand.u32 (!%p101_p3), 127, %v138_v4 }
   0xa   : > { %v140_v6 = vadd.s32 (!%p101_p3), 128, %v139_v5  ;;  %v144_v7 = vand.u32 (!%p101_p3), 15, %v139_v5  ;;  %v148_v9 = vshra.s32 (!%p101_p3), %v139_v5, 4 }
   0xc   : > { %v145_v8 = vand.u32 (!%p101_p3), 15, %v140_v6  ;;  %v149_v10 = vshra.s32 (!%p101_p3), %v140_v6, 4  ;;  %v146_v11 = vcvt.s32.f32 (!%p101_p3), %v144_v7  ;;  %v150_v13 = vcvt.s32.f32 (!%p101_p3), %v148_v9 }
   0xe   : > { %s399_s6 = smov (!%p123_p4, %s332_s6), 1  ;;  %v147_v12 = vcvt.s32.f32 %v145_v8  ;;  %v151_v14 = vcvt.s32.f32 %v149_v10  ;;  %v152_v15 = vadd.f32 0.5, %v146_v11  ;;  %v158_v17 = vadd.f32 0.5, %v150_v13 }
   0xf   : > { %s277_s10 = sshll.u32 %s399_s6, 2  ;;  %s286_s14 = sshll.u32 %s399_s6, 3 }
  0x10   : > { %s126_s13 = scalar_lea.vmem %s392_s0, %s277_s10  ;;  %v153_v16 = vadd.f32 0.5, %v147_v12  ;;  %v159_v18 = vadd.f32 0.5, %v151_v14  ;;  %v154_v19 = vmul.f32 0.0625, %v152_v15  ;;  %v160_v21 = vmul.f32 0.0625, %v158_v17  ;;  %s135_s17 = scalar_lea.vmem %s393_s1, %s286_s14 }
  0x11   : > { %v164_v2 = vld [vmem:[%s126_s13] sm:$0x7] }
  0x12   : > { %167 = vperm.xlu0 %314, %v164_v2   ;;  %181 = vperm.xlu1 %316, %v164_v2   ;;  %v155_v20 = vmul.f32 0.0625, %v153_v16  ;;  %v161_v22 = vmul.f32 0.0625, %v159_v18  ;;  %v280_v24 = vadd.f32 -0.5, %v154_v19  ;;  %v282_v26 = vadd.f32 -0.5, %v160_v21 }
  0x14   : > { %v281_v25 = vadd.f32 -0.5, %v155_v20  ;;  %v283_v27 = vadd.f32 -0.5, %v161_v22 }
  0x16   : > { %315 = vset.pattern.permute.xlu0 %v344_v3 }
  0x17   : > { %173 = vperm.xlu0 %315, %v164_v2  }
  0x1b   : > { %317 = vset.pattern.permute.xlu0 %v343_v1 }
  0x91   : > { %v168_v23 = vpop.permute.xlu0 %167  ;;  %v182_v33 = vpop.permute.xlu1 %181 }
  0x92   : > { %v170_v29 = vmul.f32 %v280_v24, %v168_v23  ;;  %v171_v30 = vmul.f32 %v281_v25, %v168_v23 }
  0x96   : > { %v174_v28 = vpop.permute.xlu0 %173 }
  0x97   : > { %v176_v31 = vmul.f32 %v282_v26, %v174_v28  ;;  %v177_v32 = vmul.f32 %v283_v27, %v174_v28 }
  0x99   : > { %v178_v34 = vadd.f32 %v176_v31, %v170_v29  ;;  %v179_v35 = vadd.f32 %v177_v32, %v171_v30 }
  0x9b   : > { %v184_v36 = vadd.f32 %v182_v33, %v178_v34  ;;  %v185_v37 = vadd.f32 %v182_v33, %v179_v35 }
  0x9d   : > { %v188_v38 = vcombine.low %v184_v36, %v185_v37 }
  0x9f   : > { %190 = vst [vmem:[%s135_s17] sm:$0x77] %v188_v38 }
  0xa0 PF: > { %s11_s8 = sadd.s32 1, %s340_s8   ;;  %s394_s6 = smov %s336_s7 }
  0xa1   : > { %p8_p5 = scmp.ge.s32.totalorder %s11_s8, 4   ;;  %s395_s7 = smov %s397_s9 }
  0xa3   :  { %10 = sbr.rel (!%p8_p5) target bundleno = 2 (0x2), region = 54 }

</bundles_post_ra>
